<compile_context>
chip_gen: v7x
topology: tpu7x:2x2x1
jax: 0.10.0
libtpu: 0.0.40
codegen_flags: <defaults>
</compile_context>

<pallas_src>
import functools

import jax
import jax.numpy as jnp
from jax.experimental import pallas as pl
from jax.experimental.pallas import tpu as pltpu


def _mha_kernel(x_ref, wqkv_ref, wo_ref, bo_ref, o_ref, *, num_heads, head_dim, d_out):
    # x_ref:    (1, T, D_in)      one batch element per grid step
    # wqkv_ref: (D_in, 3*D_out)   fused [Wq*scale | Wk | Wv] (pre-transposed, Linear y = x @ W)
    # wo_ref:   (D_out, D_out)    output projection (pre-transposed)
    # bo_ref:   (1, D_out)        output projection bias
    # o_ref:    (1, T, D_out)
    x = x_ref[0]                                                        # (T, D_in)
    T = x.shape[0]

    # Fused QKV projection: one 2-D MXU matmul with a 3*D_out-lane output.
    qkv = jnp.dot(x, wqkv_ref[...], preferred_element_type=jnp.float32)  # (T, 3*D_out)
    q = qkv[:, 0 * d_out:1 * d_out]      # Q columns pre-scaled by 1/sqrt(head_dim)
    k = qkv[:, 1 * d_out:2 * d_out]
    v = qkv[:, 2 * d_out:3 * d_out]

    # Head-major views for the per-head attention matmuls (same batched dot_general
    # patterns as the validated flash kernel: 'hqd,hkd->hqk' / 'hqk,hkd->hqd').
    qh = q.reshape(T, num_heads, head_dim).transpose(1, 0, 2)           # (H, T, hd)
    kh = k.reshape(T, num_heads, head_dim).transpose(1, 0, 2)           # (H, T, hd)
    vh = v.reshape(T, num_heads, head_dim).transpose(1, 0, 2)           # (H, T, hd)

    scores = jnp.einsum('hqd,hkd->hqk', qh, kh,
                        preferred_element_type=jnp.float32)             # (H, T, T)

    # Causal mask generated in-kernel (no HBM bias tensor): additive 0 / -1e30.
    row = jax.lax.broadcasted_iota(jnp.int32, (T, T), 0)
    col = jax.lax.broadcasted_iota(jnp.int32, (T, T), 1)
    bias = jnp.where(col <= row, 0.0, -1e30).astype(jnp.float32)        # (T, T)
    scores = scores + bias[None, :, :]

    # Numerically stable softmax in f32.  The diagonal is always unmasked, so denom > 0.
    m = jnp.max(scores, axis=-1, keepdims=True)
    e = jnp.exp(scores - m)
    denom = jnp.sum(e, axis=-1, keepdims=True)
    # EUP approximate reciprocal + one Newton step (~f32-exact, divide stays off the VPU).
    r = pl.reciprocal(denom, approx=True)
    r = r * (2.0 - denom * r)
    attn = e * r
    # TODO(synk): dropout on attn weights not implemented (eval-mode identity).

    ctx = jnp.einsum('hqk,hkd->hqd', attn, vh,
                     preferred_element_type=jnp.float32)                # (H, T, hd)

    # Output projection: concat heads and contract jointly over D_out = H*hd
    # (one K=D_out-deep MXU push instead of H hd-deep pushes + sum over heads).
    ctx_cat = ctx.transpose(1, 0, 2).reshape(T, num_heads * head_dim)   # (T, D_out)
    out = jnp.dot(ctx_cat, wo_ref[...],
                  preferred_element_type=jnp.float32) + bo_ref[...]     # (T, D_out)
    o_ref[0] = out.astype(o_ref.dtype)


def multi_head_attention(x, wq, wk, wv, wo, bo, *, num_heads):
    """x: (B, T, D_in); wq/wk/wv: (D_in, D_out); wo: (D_out, D_out); bo: (D_out,).

    Weights are the nn.Linear weights pre-transposed, so y = x @ W (+ b) matches
    PyTorch's y = x @ W.T + b.
    """
    B, T, D_in = x.shape
    D_out = wq.shape[1]
    hd = D_out // num_heads

    # ---- one-time wrapper-side (plain XLA) weight prep ----
    scale = 1.0 / (float(hd) ** 0.5)
    wqkv = jnp.concatenate([wq * scale, wk, wv], axis=1)                # (D_in, 3*D_out)
    bo2 = bo.reshape(1, D_out)

    kernel = functools.partial(_mha_kernel, num_heads=num_heads, head_dim=hd,
                               d_out=D_out)

    out = pl.pallas_call(
        kernel,
        out_shape=jax.ShapeDtypeStruct((B, T, D_out), x.dtype),
        grid=(B,),
        in_specs=[
            pl.BlockSpec((1, T, D_in), lambda b: (b, 0, 0)),            # per-batch x tile
            pl.BlockSpec((D_in, 3 * D_out), lambda b: (0, 0)),          # weights resident
            pl.BlockSpec((D_out, D_out), lambda b: (0, 0)),
            pl.BlockSpec((1, D_out), lambda b: (0, 0)),
        ],
        out_specs=pl.BlockSpec((1, T, D_out), lambda b: (b, 0, 0)),
        compiler_params=pltpu.CompilerParams(
            # Batch axis is independent -> shard across TensorCores (v7x megacore).
            dimension_semantics=("parallel",),
        ),
    )(x, wqkv, wo, bo2)

    return out


def _reference(x, wq, wk, wv, wo, bo, *, num_heads):
    B, T, D_in = x.shape
    D_out = wq.shape[1]
    hd = D_out // num_heads
    q = (x @ wq).reshape(B, T, num_heads, hd).transpose(0, 2, 1, 3)
    k = (x @ wk).reshape(B, T, num_heads, hd).transpose(0, 2, 1, 3)
    v = (x @ wv).reshape(B, T, num_heads, hd).transpose(0, 2, 1, 3)
    scores = jnp.einsum('bhqd,bhkd->bhqk', q, k) / (hd ** 0.5)
    mask = jnp.triu(jnp.ones((T, T), dtype=bool), k=1)
    scores = jnp.where(mask, -jnp.inf, scores)
    attn = jax.nn.softmax(scores, axis=-1)
    ctx = jnp.einsum('bhqk,bhkd->bhqd', attn, v).transpose(0, 2, 1, 3).reshape(B, T, D_out)
    return ctx @ wo + bo


if __name__ == "__main__":
    # Small shapes consistent with the module:
    #   batch=2, seq(tokens)=8, d_in=16, d_out=32, num_heads=4, qkv_bias=False
    B, T, D_in, D_out, H = 2, 8, 16, 32, 4

    key = jax.random.PRNGKey(0)
    kx, kq, kk, kv, ko, kb = jax.random.split(key, 6)

    x = jax.random.normal(kx, (B, T, D_in), dtype=jnp.float32)
    # nn.Linear weights are (d_out, d_in); stored pre-transposed as (d_in, d_out).
    wq = jax.random.normal(kq, (D_in, D_out), dtype=jnp.float32) * 0.1
    wk = jax.random.normal(kk, (D_in, D_out), dtype=jnp.float32) * 0.1
    wv = jax.random.normal(kv, (D_in, D_out), dtype=jnp.float32) * 0.1
    wo = jax.random.normal(ko, (D_out, D_out), dtype=jnp.float32) * 0.1
    bo = jax.random.normal(kb, (D_out,), dtype=jnp.float32) * 0.1

    out = multi_head_attention(x, wq, wk, wv, wo, bo, num_heads=H)
    out = jax.block_until_ready(out)

    ref = _reference(x, wq, wk, wv, wo, bo, num_heads=H)
    assert out.shape == (B, T, D_out)
    assert jnp.allclose(out, ref, atol=1e-4, rtol=1e-4), "mismatch vs reference"

    print("KERNEL_OK")
</pallas_src>

<mosaic_0001>
module attributes {stable_mosaic.version = 11 : i64} {
  func.func @_mha_kernel(%arg0: i32, %arg1: memref<1x8x16xf32, #tpu.memory_space<vmem>>, %arg2: memref<16x96xf32, #tpu.memory_space<vmem>>, %arg3: memref<32x32xf32, #tpu.memory_space<vmem>>, %arg4: memref<1x32xf32, #tpu.memory_space<vmem>>, %arg5: memref<1x8x32xf32, #tpu.memory_space<vmem>>) attributes {dimension_semantics = [#tpu.dimension_semantics<parallel>], iteration_bounds = array<i64: 2>, scalar_prefetch = 0 : i64, scratch_operands = 0 : i64, tpu.core_type = #tpu.core_type<tc>, window_params = [{transform_indices = @transform_0, window_bounds = array<i64: 1, 8, 16>}, {pipeline_mode = #tpu.pipeline_mode<synchronous>, transform_indices = @transform_1, window_bounds = array<i64: 16, 96>}, {pipeline_mode = #tpu.pipeline_mode<synchronous>, transform_indices = @transform_2, window_bounds = array<i64: 32, 32>}, {pipeline_mode = #tpu.pipeline_mode<synchronous>, transform_indices = @transform_3, window_bounds = array<i64: 1, 32>}, {transform_indices = @transform_4, window_bounds = array<i64: 1, 8, 32>}]} {
    %c0 = arith.constant 0 : index
    %c0_0 = arith.constant 0 : index
    %c0_1 = arith.constant 0 : index
    %0 = vector.load %arg1[%c0, %c0_0, %c0_1] : memref<1x8x16xf32, #tpu.memory_space<vmem>>, vector<1x8x16xf32>
    %1 = vector.shape_cast %0 : vector<1x8x16xf32> to vector<8x16xf32>
    %c0_2 = arith.constant 0 : index
    %c0_3 = arith.constant 0 : index
    %2 = vector.load %arg2[%c0_2, %c0_3] : memref<16x96xf32, #tpu.memory_space<vmem>>, vector<16x96xf32>
    %cst = arith.constant dense<0.000000e+00> : vector<8x96xf32>
    %3 = tpu.matmul %1, %2, %cst {dimension_numbers = #tpu.dot_dimension_numbers<[1], [0], [0], [1], [0, 0, 1, 1], [], []>} : vector<8x16xf32>, vector<16x96xf32>, vector<8x96xf32> -> vector<8x96xf32>
    %4 = vector.extract_strided_slice %3 {offsets = [0, 0], sizes = [8, 32], strides = [1, 1]} : vector<8x96xf32> to vector<8x32xf32>
    %5 = vector.extract_strided_slice %3 {offsets = [0, 32], sizes = [8, 32], strides = [1, 1]} : vector<8x96xf32> to vector<8x32xf32>
    %6 = vector.extract_strided_slice %3 {offsets = [0, 64], sizes = [8, 32], strides = [1, 1]} : vector<8x96xf32> to vector<8x32xf32>
    %7 = vector.shape_cast %4 : vector<8x32xf32> to vector<8x4x8xf32>
    %8 = tpu.transpose %7, [1, 0, 2] : vector<8x4x8xf32> -> vector<4x8x8xf32>
    %9 = vector.shape_cast %5 : vector<8x32xf32> to vector<8x4x8xf32>
    %10 = tpu.transpose %9, [1, 0, 2] : vector<8x4x8xf32> -> vector<4x8x8xf32>
    %11 = vector.shape_cast %6 : vector<8x32xf32> to vector<8x4x8xf32>
    %12 = tpu.transpose %11, [1, 0, 2] : vector<8x4x8xf32> -> vector<4x8x8xf32>
    "tpu.trace_start"() <{level = 10 : i32, message = "hqd,hkd->hqk"}> : () -> ()
    %cst_4 = arith.constant dense<0.000000e+00> : vector<4x8x8xf32>
    %13 = tpu.matmul %8, %10, %cst_4 {dimension_numbers = #tpu.dot_dimension_numbers<[2], [2], [1], [1], [0, 0, 0, 1, 1, 1], [0], [0]>} : vector<4x8x8xf32>, vector<4x8x8xf32>, vector<4x8x8xf32> -> vector<4x8x8xf32>
    "tpu.trace_stop"() : () -> ()
    %14 = tpu.iota {dimensions = array<i32: 0>} : vector<8x8xi32>
    %15 = tpu.iota {dimensions = array<i32: 1>} : vector<8x8xi32>
    %16 = arith.cmpi sle, %15, %14 : vector<8x8xi32>
    %cst_5 = arith.constant 0.000000e+00 : f32
    %cst_6 = arith.constant -1.000000e+30 : f32
    %17 = vector.broadcast %cst_5 : f32 to vector<8x8xf32>
    %18 = vector.broadcast %cst_6 : f32 to vector<8x8xf32>
    %19 = arith.select %16, %17, %18 : vector<8x8xi1>, vector<8x8xf32>
    %20 = vector.shape_cast %19 : vector<8x8xf32> to vector<1x8x8xf32>
    %21 = vector.broadcast %20 : vector<1x8x8xf32> to vector<4x8x8xf32>
    %22 = arith.addf %13, %21 : vector<4x8x8xf32>
    %cst_7 = arith.constant dense<0xFF800000> : vector<4x8xf32>
    %23 = vector.multi_reduction <maximumf>, %22, %cst_7 [2] : vector<4x8x8xf32> to vector<4x8xf32>
    %24 = vector.shape_cast %23 : vector<4x8xf32> to vector<4x8x1xf32>
    %25 = vector.broadcast %24 : vector<4x8x1xf32> to vector<4x8x8xf32>
    %26 = arith.subf %22, %25 : vector<4x8x8xf32>
    %27 = math.exp %26 : vector<4x8x8xf32>
    %cst_8 = arith.constant dense<0.000000e+00> : vector<4x8xf32>
    %28 = vector.multi_reduction <add>, %27, %cst_8 [2] : vector<4x8x8xf32> to vector<4x8xf32>
    %29 = vector.shape_cast %28 : vector<4x8xf32> to vector<4x8x1xf32>
    %30 = tpu.reciprocal %29 {approx = true} : vector<4x8x1xf32> -> vector<4x8x1xf32>
    %31 = arith.mulf %29, %30 : vector<4x8x1xf32>
    %cst_9 = arith.constant 2.000000e+00 : f32
    %32 = vector.broadcast %cst_9 : f32 to vector<4x8x1xf32>
    %33 = arith.subf %32, %31 : vector<4x8x1xf32>
    %34 = arith.mulf %30, %33 : vector<4x8x1xf32>
    %35 = vector.broadcast %34 : vector<4x8x1xf32> to vector<4x8x8xf32>
    %36 = arith.mulf %27, %35 : vector<4x8x8xf32>
    "tpu.trace_start"() <{level = 10 : i32, message = "hqk,hkd->hqd"}> : () -> ()
    %cst_10 = arith.constant dense<0.000000e+00> : vector<4x8x8xf32>
    %37 = tpu.matmul %36, %12, %cst_10 {dimension_numbers = #tpu.dot_dimension_numbers<[2], [1], [1], [2], [0, 0, 0, 1, 1, 2], [0], [0]>} : vector<4x8x8xf32>, vector<4x8x8xf32>, vector<4x8x8xf32> -> vector<4x8x8xf32>
    "tpu.trace_stop"() : () -> ()
    %38 = tpu.transpose %37, [1, 0, 2] : vector<4x8x8xf32> -> vector<8x4x8xf32>
    %39 = vector.shape_cast %38 : vector<8x4x8xf32> to vector<8x32xf32>
    %c0_11 = arith.constant 0 : index
    %c0_12 = arith.constant 0 : index
    %40 = vector.load %arg3[%c0_11, %c0_12] : memref<32x32xf32, #tpu.memory_space<vmem>>, vector<32x32xf32>
    %cst_13 = arith.constant dense<0.000000e+00> : vector<8x32xf32>
    %41 = tpu.matmul %39, %40, %cst_13 {dimension_numbers = #tpu.dot_dimension_numbers<[1], [0], [0], [1], [0, 0, 1, 1], [], []>} : vector<8x32xf32>, vector<32x32xf32>, vector<8x32xf32> -> vector<8x32xf32>
    %c0_14 = arith.constant 0 : index
    %c0_15 = arith.constant 0 : index
    %42 = vector.load %arg4[%c0_14, %c0_15] : memref<1x32xf32, #tpu.memory_space<vmem>>, vector<1x32xf32>
    %43 = vector.broadcast %42 : vector<1x32xf32> to vector<8x32xf32>
    %44 = arith.addf %41, %43 : vector<8x32xf32>
    %c0_16 = arith.constant 0 : index
    %c0_17 = arith.constant 0 : index
    %c0_18 = arith.constant 0 : index
    %45 = vector.load %arg5[%c0_16, %c0_17, %c0_18] : memref<1x8x32xf32, #tpu.memory_space<vmem>>, vector<1x8x32xf32>
    %46 = vector.shape_cast %45 : vector<1x8x32xf32> to vector<8x32xf32>
    %47 = vector.shape_cast %44 : vector<8x32xf32> to vector<1x8x32xf32>
    tpu.vector_store %arg5[%c0_16, %c0_17, %c0_18], %47 {strides = array<i32>} : memref<1x8x32xf32, #tpu.memory_space<vmem>>, vector<1x8x32xf32>,
    return
  }
  func.func @transform_0(%arg0: i32) -> (i32, i32, i32) {
    %c0_i32 = arith.constant 0 : i32
    %c0_i32_0 = arith.constant 0 : i32
    %c0_i32_1 = arith.constant 0 : i32
    return %arg0, %c0_i32, %c0_i32_0 : i32, i32, i32
  }
  func.func @transform_1(%arg0: i32) -> (i32, i32) {
    %c0_i32 = arith.constant 0 : i32
    %c0_i32_0 = arith.constant 0 : i32
    %c0_i32_1 = arith.constant 0 : i32
    return %c0_i32, %c0_i32_0 : i32, i32
  }
  func.func @transform_2(%arg0: i32) -> (i32, i32) {
    %c0_i32 = arith.constant 0 : i32
    %c0_i32_0 = arith.constant 0 : i32
    %c0_i32_1 = arith.constant 0 : i32
    return %c0_i32, %c0_i32_0 : i32, i32
  }
  func.func @transform_3(%arg0: i32) -> (i32, i32) {
    %c0_i32 = arith.constant 0 : i32
    %c0_i32_0 = arith.constant 0 : i32
    %c0_i32_1 = arith.constant 0 : i32
    return %c0_i32, %c0_i32_0 : i32, i32
  }
  func.func @transform_4(%arg0: i32) -> (i32, i32, i32) {
    %c0_i32 = arith.constant 0 : i32
    %c0_i32_0 = arith.constant 0 : i32
    %c0_i32_1 = arith.constant 0 : i32
    return %arg0, %c0_i32, %c0_i32_0 : i32, i32, i32
  }
}

</mosaic_0001>

<bundles_post_ra>
// kernel: tpu_custom_call.1
= control target key start
LH: loop header
LB: loop body
LE: loop exit
PB: predicated region body
PF: predicated region fallthrough
CT: control target
= control target key end

     0   :  { %9 = vsyncpa [#allocation3], 0  ;;  %s2605_s0 = inlined_call_operand.hbm [shape: f32[2,8,16], index: 0, kind: input, shape index: {}]   ;;  %s2606_s1 = inlined_call_operand.hbm [shape: f32[16,96], index: 1, kind: input, shape index: {}]   ;;  %s2607_s2 = inlined_call_operand.hbm [shape: f32[32,32], index: 2, kind: input, shape index: {}]   ;;  %s2608_s3 = inlined_call_operand.vmem [shape: f32[1,32], index: 3, kind: input, shape index: {}]   ;;  %s2609_s4 = inlined_call_operand.hbm [shape: f32[2,8,32], index: 4, kind: output, shape index: {}]  }
   0x1   :  { %11 = vsyncpa [#allocation3 + $0x1], 0 }
   0x2   :  { %12 = vsyncpa [#allocation6], 0 }
   0x3   :  { %13 = vsyncpa [#allocation4], 0 }
   0x4   :  { %15 = vsyncpa [#allocation4 + $0x1], 0  ;;  %s2193_s15 = smov 0   ;;  %s2195_s16 = smov 0  }
   0x5   :  { %s2197_s17 = smov 0   ;;  %s2199_s18 = smov 0  }
   0x6 LB: > { %s2214_s19 = sadd.s32 4294967295, %s2146_s18   ;;  %s1761_s20 = sadd.s32 4294967294, %s2146_s18   ;;  %s2146_s18 = sphi %s2199_s18, %s2629_s18   ;;  %s2142_s17 = sphi %s2197_s17, %s2628_s17   ;;  %s2138_s16 = sphi %s2195_s16, %s2627_s16   ;;  %s2134_s15 = sphi %s2193_s15, %s2626_s15  }
   0x7   : > { %p41_p0 = scmp.ne.s32.totalorder %s2138_s16, %s2134_s15  ;;  %p2610_p1 = scmp.eq.s32.totalorder %s2214_s19, 0 }
   0x8   : > { %p134_p3 = scmp.eq.s32.totalorder %s1761_s20, 1  ;;  %p1762_p5 = scmp.ge.s32.totalorder %s2146_s18, 1 }
   0x9   : > { %p2223_p4 = por %p2610_p1, %p41_p0  ;;  %p141_p7 = scmp.lt.s32.totalorder %s2146_s18, 3 }
   0xa   : > { %p2228_p6 = por %p134_p3, %p41_p0  ;;  %s2148_s24 = smov [#allocation5]  }
   0xb   : > { %s2613_s21 = scalar_select %p2223_p4, 1, 0 }
   0xc   : > { %s2614_s22 = scalar_select %p2228_p6, 1, 0 }
   0xd   : > { %p2233_p8 = pnand %p1762_p5, %p141_p7  ;;  %s153_s25 = sshll.u32 %s2148_s24, 4  ;;  %s2237_s25 = int_to_ptr.vmem [resolvable:$true] %s153_s25 }
   0xe   : > { %s2149_s27 = smov [#allocation7]   ;;  %s1990_s5 = scalar_lea.hbm %s2606_s1, 256 }
   0xf   : > { %p1903_p9 = pneg %p2233_p8  ;;  %s166_s28 = sshll.u32 %s2149_s27, 4  ;;  %s2248_s28 = int_to_ptr.vmem [resolvable:$true] %s166_s28 }
  0x10   : > { %p1991_p12 = scmp.ne.s32.totalorder %s2606_s1, %s1990_s5  ;;  %p1997_p5 = scmp.lt.u32.totalorder %s1990_s5, %s2606_s1 }
  0x11   : > { %p2244_p11 = pnand %p1903_p9, %p2610_p1 }
  0x13   : > { %p1992_p13 = pneg %p2244_p11 }
  0x15   : > { %p1993_p0 = pnand %p1992_p13, %p1991_p12 }
  0x17   : > { %p1994_p3 = pneg %p1993_p0 }
  0x19   : > { %p1999_p7 = pnand %p1997_p5, %p1994_p3 }
  0x1b   : > { %2002 = shalt.err (!%p1999_p7)
}
  0x1c   : > { %s2003_s10 = scalar_lea.vmem %s2237_s25, 256  ;;  %p2011_p2 = scmp.lt.s32.totalorder %s2237_s25, %s2237_s25 }
  0x1d   : > { %p2004_p9 = scmp.ne.s32.totalorder %s2237_s25, %s2003_s10  ;;  %p2012_p12 = scmp.lt.s32.totalorder %s2003_s10, %s2003_s10 }
  0x1f   : > { %p2006_p10 = pnand %p2004_p9, %p1992_p13  ;;  %p2013_p0 = por %p2012_p12, %p2011_p2 }
  0x21   : > { %p2007_p1 = pneg %p2006_p10 }
  0x23   : > { %p2014_p6 = pnand %p2013_p0, %p2007_p1 }
  0x25   : > { %2017 = shalt.err (!%p2014_p6)
}
  0x26   : > { %s2150_s11 = smov 128   ;;  %s2151_s12 = smov 8  }
  0x27   : > { %1906 = dma.hbm_to_vmem [thread:$0]  (!%p2244_p11), %s2606_s1, 256, %s2237_s25, [#allocation6], %s2150_s11, %s2150_s11, %s2151_s12  }
  0x28   : > { %s2018_s27 = scalar_lea.hbm %s2607_s2, 512 }
  0x29   : > { %p2019_p2 = scmp.ne.s32.totalorder %s2607_s2, %s2018_s27  ;;  %p2025_p10 = scmp.lt.u32.totalorder %s2018_s27, %s2607_s2 }
  0x2b   : > { %p2021_p1 = pnand %p2019_p2, %p1992_p13 }
  0x2d   : > { %p2022_p6 = pneg %p2021_p1 }
  0x2f   : > { %p2027_p3 = pnand %p2025_p10, %p2022_p6 }
  0x31   : > { %2030 = shalt.err (!%p2027_p3)
}
  0x32   : > { %s2031_s25 = scalar_lea.vmem %s2248_s28, 512  ;;  %p2039_p12 = scmp.lt.s32.totalorder %s2248_s28, %s2248_s28 }
  0x33   : > { %p2032_p5 = scmp.ne.s32.totalorder %s2248_s28, %s2031_s25  ;;  %p2040_p0 = scmp.lt.s32.totalorder %s2031_s25, %s2031_s25 }
  0x35   : > { %p2034_p7 = pnand %p2032_p5, %p1992_p13  ;;  %p2041_p2 = por %p2040_p0, %p2039_p12 }
  0x37   : > { %p2035_p9 = pneg %p2034_p7 }
  0x39   : > { %p2042_p1 = pnand %p2041_p2, %p2035_p9 }
  0x3b   : > { %2045 = shalt.err (!%p2042_p1)
}
  0x3c   : > { %1909 = dma.hbm_to_vmem [thread:$0]  (!%p2244_p11), %s2607_s2, 512, %s2248_s28, [#allocation6], %s2150_s11, %s2150_s11, %s2151_s12  }
  0x3d   : > { %s2303_s9 = sadd.s32 1, %s2146_s18   ;;  %s28_s26 = sadd.s32 1, %s2142_s17 }
  0x3e   : > { %s25_s10 = ssub.s32 %s2146_s18, %s2303_s9  ;;  %p35_p13 = scmp.ne.s32.totalorder %s2142_s17, %s2138_s16 }
  0x3f   : > { %p26_p6 = scmp.eq.s32.totalorder %s25_s10, 0  ;;  %p36_p10 = scmp.eq.s32.totalorder %s2146_s18, 0 }
  0x40   : > { %p2617_p3 = scmp.eq.s32.totalorder %s2214_s19, 1  ;;  %p1920_p7 = scmp.lt.s32.totalorder %s2146_s18, 2 }
  0x41   : > { %s2319_s14 = scalar_select %p26_p6, %s2142_s17, %s28_s26  }
  0x42   : > { %p2313_p5 = por %p2617_p3, %p35_p13  ;;  %p37_p9 = por %p36_p10, %p35_p13 }
  0x43   : > { %s183_s20 = sand.u32 1, %s2142_s17   ;;  %s1767_s28 = sshll.u32 %s2146_s18, 7 }
  0x44   : > { %s2618_s13 = scalar_select %p2313_p5, 1, 0 }
  0x45   : > { %s1766_s24 = sshll.u32 %s183_s20, 3  ;;  %s2326_s27 = scalar_lea.hbm %s2605_s0, %s1767_s28 }
  0x46   : > { %s187_s29 = scalar_lea.vmem [#allocation2], %s1766_s24  ;;  %p2330_p11 = pnand %p1920_p7, %p37_p9 }
  0x47   : > { %s194_s30 = sshll.u32 %s187_s29, 4  ;;  %s184_s6 = scalar_lea.sflag [#allocation3], %s183_s20  ;;  %s2328_s30 = int_to_ptr.vmem [resolvable:$true] %s194_s30 }
  0x48   : > { %s2046_s25 = scalar_lea.hbm %s2326_s27, 128  ;;  %p2048_p0 = pneg %p2330_p11 }
  0x49   : > { %p2047_p12 = scmp.ne.s32.totalorder %s2326_s27, %s2046_s25  ;;  %s2051_s26 = scalar_lea.hbm %s2605_s0, 256 }
  0x4a   : > { %p2052_p13 = scmp.lt.u32.totalorder %s2326_s27, %s2605_s0  ;;  %p2053_p6 = scmp.lt.u32.totalorder %s2051_s26, %s2046_s25 }
  0x4b   : > { %p2049_p2 = pnand %p2048_p0, %p2047_p12  ;;  %p2055_p3 = scmp.lt.u32.totalorder %s2046_s25, %s2326_s27 }
  0x4c   : > { %p2054_p10 = por %p2053_p6, %p2052_p13 }
  0x4d   : > { %p2050_p1 = pneg %p2049_p2 }
  0x4e   : > { %p2056_p7 = por %p2055_p3, %p2054_p10 }
  0x50   : > { %p2057_p9 = pnand %p2056_p7, %p2050_p1 }
  0x52   : > { %2060 = shalt.err (!%p2057_p9)
}
  0x53   : > { %s2061_s20 = scalar_lea.vmem %s2328_s30, 128  ;;  %s2152_s28 = smov [#allocation2]  }
  0x54   : > { %p2062_p12 = scmp.ne.s32.totalorder %s2328_s30, %s2061_s20  ;;  %s2066_s11 = sshll.u32 %s2152_s28, 4  ;;  %s2067_s11 = int_to_ptr.vmem [resolvable:$false] %s2066_s11 }
  0x55   : > { %s2068_s12 = scalar_lea.vmem %s2067_s11, 256  ;;  %p2069_p4 = scmp.lt.s32.totalorder %s2328_s30, %s2067_s11 }
  0x56   : > { %p2064_p2 = pnand %p2062_p12, %p2048_p0  ;;  %p2070_p13 = scmp.lt.s32.totalorder %s2068_s12, %s2061_s20 }
  0x58   : > { %p2065_p5 = pneg %p2064_p2  ;;  %p2071_p6 = por %p2070_p13, %p2069_p4 }
  0x5a   : > { %p2072_p10 = pnand %p2071_p6, %p2065_p5 }
  0x5c   : > { %2075 = shalt.err (!%p2072_p10)
}
  0x5d   : > { %1913 = dma.hbm_to_vmem [thread:$0]  (!%p2330_p11), %s2326_s27, 128, %s2328_s30, %s184_s6  }
  0x5e   : > { %203 = sbr.rel (%p2233_p8) target bundleno = 1703 (0x6a7), region = 36  ;;  %s2362_s29 = sand.u32 (!%p2233_p8), 1, %s2138_s16  }
  0x5f   : > { %s1769_s25 = sshll.u32 (!%p2233_p8), %s2362_s29, 3  ;;  %s206_s7 = scalar_lea.sflag (!%p2233_p8), [#allocation3], %s2362_s29 }
  0x60   : > { %s209_s8 = scalar_lea.vmem (!%p2233_p8), [#allocation2], %s1769_s25  ;;  %p2620_p4 = scmp.ne.s32.totalorder (!%p2233_p8), %s2613_s21, 0 }
  0x65   : > { %2121 = dma.done.wait (%p2620_p4), %s206_s7, 128  }
  0x66   : > { %2123 = vsyncadd (%p2620_p4), %s206_s7, 4294967168  ;;  %p2621_p5 = scmp.eq.s32.totalorder %s2214_s19, 0 }
  0x68   : > { %2125 = dma.done.wait (%p2621_p5), [#allocation6], 768   ;;  %p2622_p8 = pmov %p2621_p5 }
  0x69   : > { %v2153_v0 = vmov 0.0|0.0   ;;  %vm2154_vm0 = vmmov 0   ;;  %v2155_v1 = vmov 0.0   ;;  %v243_v2 = vld [vmem:[#allocation5] sm:$0xff]  ;;  %v244_v3 = vld [vmem:[#allocation5 + $0x8] sm:$0xff]  ;;  %v242_v5 = vld [vmem:[%s209_s8] sm:$0xff]  ;;  %v334_v13 = vlaneseq }
  0x6a   : > { %2127 = vsyncadd (%p2622_p8), [#allocation6], 4294966528  ;;  %1882 = vmatprep.subr.bf16.mxu0 %v2153_v0  ;;  %1828 = vmatprep.mubr.msk.f32.mxu0 %vm2154_vm0, %v2155_v1  ;;  %v1883_v4 = vpack.c.bf16 %v244_v3, %v243_v2  ;;  %vm245_vm1 = vcmask 130048   ;;  %s2156_s21 = smov 104   ;;  %s2157_s23 = smov 120   ;;  %vm767_vm2 = vcmask 64512  }
  0x6b   : > { %1831 = vmatprep.subr.mxu1 %v2155_v1  ;;  %1833 = vmatprep.mubr.msk.f32.mxu1 %vm2154_vm0, %v2155_v1  ;;  %s2158_s27 = smov 96   ;;  %s2159_s30 = smov 112   ;;  %v2160_v11 = vmov 1983009808   ;;  %v2402_v15 = vshrl.u32 %v334_v13, 7  ;;  %vm1570_vm4 = vcmask 195584  }
  0x6c   : > { %1884 = vmatpush3.bf16.msra.mxu0 %v1883_v4  ;;  %v332_v12 = vunpack.c.l.s4 %v2160_v11  ;;  %v2161_v16 = vmov 1934713408   ;;  %s2163_s5 = smov 64   ;;  %s2164_s6 = smov 16   ;;  %vm1583_vm5 = vcmask 261120  }
  0x6d   : > { %1836 = vmatprep.subr.mxu0 %v2155_v1  ;;  %v364_v17 = vunpack.c.l.s4 %v2161_v16  ;;  %s2165_s26 = smov 8   ;;  %s2166_s10 = smov 24  }
  0x6e   : > { %v333_v14 = vunpack.c.0.s8 %v332_v12  ;;  %s1797_s28 = sshll.u32 %s2214_s19, 7  ;;  %s241_s11 = scalar_lea.vmem [#allocation8], %s1769_s25 }
  0x6f   : > { %1829 = vmatmul.mubr.msk.f32.vlgmr.msra.gmra.mrb[0].mxu0 %vm245_vm1, %v242_v5  ;;  %v365_v23 = vunpack.c.0.s8 %v364_v17  ;;  %s1672_s12 = sshll.u32 %s241_s11, 4  ;;  %p2623_p0 = scmp.ne.s32.totalorder %s2618_s13, 0  ;;  %s2563_s12 = int_to_ptr.vmem [resolvable:$true] %s1672_s12 }
  0x70   : > { %1838 = vmatprep.mubr.msk.f32.mxu0 %vm2154_vm0, %v2155_v1  ;;  %v2409_v20 = vsub.s32 %v333_v14, %v2402_v15  ;;  %s2167_s19 = smov [#allocation8]  }
  0x71   : > { %v2420_v28 = vsub.s32 %v365_v23, %v2402_v15  ;;  %s2080_s25 = sshll.u32 %s2167_s19, 4  ;;  %s2081_s25 = int_to_ptr.vmem [resolvable:$false] %s2080_s25 }
  0x72   : > { %p2083_p7 = scmp.lt.s32.totalorder %s2563_s12, %s2081_s25 }
 0x142   : > { %v2386_v6 = vpop.f32.mrb[0].mxu0 }
 0x143   : > { %326 = vrot.lane.b32.xlu1 %v2386_v6, %s2156_s21  ;;  %320 = vrot.lane.b32.xlu0 %v2386_v6, %s2157_s23  ;;  %v1830_v7 = vpop.f32.mrb[1].mxu0  ;;  %s2561_s21 = scalar_lea.hbm %s2609_s4, %s1797_s28  ;;  %s1659_s23 = scalar_lea.sflag [#allocation4], %s2362_s29 }
 0x147   : > { %465 = vrot.lane.b32.xlu1 %v2386_v6, %s2158_s27  ;;  %323 = vrot.lane.b32.xlu0 %v2386_v6, %s2159_s30  ;;  %s2082_s30 = scalar_lea.vmem %s2081_s25, 256 }
 0x1b5   : > { %v2392_v8 = vpop.permute.xlu0 %320  ;;  %v2395_v9 = vpop.permute.xlu1 %326 }
 0x1b6   : > { %467 = vrot.lane.b32.xlu0 %v2392_v8, %s2158_s27  ;;  %v345_v21 = vcombine.low %v2392_v8, %v2395_v9  ;;  %v346_v22 = vcombine.high %v2392_v8, %v2395_v9 }
 0x1b8   : > { %v353_v26 = vrot.slane %v345_v21, %v2409_v20  ;;  %v360_v27 = vrot.slane %v346_v22, %v2409_v20 }
 0x1b9   : > { %v2397_v10 = vpop.permute.xlu0 %323  ;;  %v466_v29 = vpop.permute.xlu1 %465 }
 0x1ba   : > { %471 = vrot.lane.b32.xlu0 %v2395_v9, %s2158_s27  ;;  %469 = vrot.lane.b32.xlu1 %v2397_v10, %s2158_s27  ;;  %v329_v18 = vcombine.low %v2386_v6, %v2397_v10  ;;  %v330_v19 = vcombine.high %v2386_v6, %v2397_v10  ;;  %s2076_s27 = scalar_lea.vmem %s2563_s12, 128 }
 0x1bb   : > { %p2077_p11 = scmp.ne.s32.totalorder %s2563_s12, %s2076_s27  ;;  %p2084_p9 = scmp.lt.s32.totalorder %s2082_s30, %s2076_s27 }
 0x1bc   : > { %v337_v24 = vrot.slane %v329_v18, %v2409_v20  ;;  %v344_v25 = vrot.slane %v330_v19, %v2409_v20 }
 0x1bd   : > { %p2078_p1 = pnand %p2077_p11, %p2623_p0  ;;  %p2085_p12 = por %p2084_p9, %p2083_p7 }
 0x1be   : > { %v361_v30 = vcombine.low %v337_v24, %v353_v26  ;;  %v362_v31 = vcombine.high %v337_v24, %v353_v26  ;;  %v377_v32 = vcombine.low %v344_v25, %v360_v27  ;;  %v378_v33 = vcombine.high %v344_v25, %v360_v27 }
 0x1bf   : > { %p2079_p3 = pneg %p2078_p1 }
 0x1c0   : > { %v369_v35 = vrot.slane %v361_v30, %v2420_v28  ;;  %v376_v36 = vrot.slane %v362_v31, %v2420_v28  ;;  %v385_v37 = vrot.slane %v377_v32, %v2420_v28  ;;  %v392_v38 = vrot.slane %v378_v33, %v2420_v28 }
 0x1c1   : > { %p2086_p2 = pnand %p2085_p12, %p2079_p3 }
 0x1c2   : > { %v397_v49 = vcombine.low %v369_v35, %v376_v36  ;;  %v1774_v50 = vcombine.high %v369_v35, %v376_v36  ;;  %v413_v51 = vcombine.low %v385_v37, %v392_v38  ;;  %v1775_v52 = vcombine.high %v385_v37, %v392_v38 }
 0x1c4   : > { %v404_v61 = vrot.slane %v397_v49, %v2409_v20  ;;  %v412_v62 = vrot.slane %v1774_v50, %v2409_v20  ;;  %v420_v63 = vrot.slane %v413_v51, %v2409_v20  ;;  %v428_v2 = vrot.slane %v1775_v52, %v2409_v20 }
 0x1c6   : > { %v429_v17 = vcombine.low %v404_v61, %v412_v62  ;;  %v445_v18 = vcombine.low %v420_v63, %v428_v2  ;;  %v430_v26 = vcombine.high %v404_v61, %v412_v62 }
 0x1c8   : > { %v437_v27 = vrot.slane %v429_v17, %v2420_v28  ;;  %v453_v30 = vrot.slane %v445_v18, %v2420_v28  ;;  %v444_v35 = vrot.slane %v430_v26, %v2420_v28 }
 0x1ca   : > { %v461_v36 = vcombine.low %v437_v27, %v453_v30  ;;  %v462_v37 = vcombine.high %v437_v27, %v453_v30 }
 0x228   : > { %v468_v34 = vpop.permute.xlu0 %467 }
 0x22c   : > { %v470_v39 = vpop.permute.xlu1 %469  ;;  %v472_v40 = vpop.permute.xlu0 %471 }
 0x22d   : > { %v477_v41 = vcombine.low %v466_v29, %v470_v39  ;;  %v478_v42 = vcombine.high %v466_v29, %v470_v39  ;;  %v493_v43 = vcombine.low %v468_v34, %v472_v40  ;;  %v494_v44 = vcombine.high %v468_v34, %v472_v40 }
 0x22e   : > { %v446_v29 = vcombine.high %v420_v63, %v428_v2 }
 0x22f   : > { %v485_v45 = vrot.slane %v477_v41, %v2409_v20  ;;  %v492_v46 = vrot.slane %v478_v42, %v2409_v20  ;;  %v501_v47 = vrot.slane %v493_v43, %v2409_v20  ;;  %v508_v48 = vrot.slane %v494_v44, %v2409_v20 }
 0x230   : > { %v460_v38 = vrot.slane %v446_v29, %v2420_v28  ;;  %v764_v43 = vand.u32 127, %v334_v13  ;;  %v2162_v44 = vmov -1e+30  }
 0x231   : > { %v509_v53 = vcombine.low %v485_v45, %v501_v47  ;;  %v510_v54 = vcombine.high %v485_v45, %v501_v47  ;;  %v525_v55 = vcombine.low %v492_v46, %v508_v48  ;;  %v526_v56 = vcombine.high %v492_v46, %v508_v48 }
 0x232   : > { %v463_v41 = vcombine.low %v444_v35, %v460_v38  ;;  %v464_v42 = vcombine.high %v444_v35, %v460_v38  ;;  %vm765_vm3 = vcmp.le.s32.totalorder %v764_v43, %v2402_v15 }
 0x233   : > { %v517_v57 = vrot.slane %v509_v53, %v2420_v28  ;;  %v524_v58 = vrot.slane %v510_v54, %v2420_v28  ;;  %v533_v59 = vrot.slane %v525_v55, %v2420_v28  ;;  %v540_v60 = vrot.slane %v526_v56, %v2420_v28 }
 0x234   : > { %v766_v45 = vsel %vm765_vm3, 0.0, %v2162_v44 }
 0x235   : > { %v545_v3 = vcombine.low %v517_v57, %v524_v58  ;;  %v1776_v4 = vcombine.high %v517_v57, %v524_v58  ;;  %v561_v5 = vcombine.low %v533_v59, %v540_v60  ;;  %v1777_v7 = vcombine.high %v533_v59, %v540_v60 }
 0x237   : > { %v552_v11 = vrot.slane %v545_v3, %v2409_v20  ;;  %v560_v12 = vrot.slane %v1776_v4, %v2409_v20  ;;  %v568_v14 = vrot.slane %v561_v5, %v2409_v20  ;;  %v576_v16 = vrot.slane %v1777_v7, %v2409_v20 }
 0x239   : > { %v577_v19 = vcombine.low %v552_v11, %v560_v12  ;;  %v578_v21 = vcombine.high %v552_v11, %v560_v12  ;;  %v593_v22 = vcombine.low %v568_v14, %v576_v16  ;;  %v594_v23 = vcombine.high %v568_v14, %v576_v16 }
 0x23b   : > { %v585_v24 = vrot.slane %v577_v19, %v2420_v28  ;;  %v601_v25 = vrot.slane %v593_v22, %v2420_v28  ;;  %v592_v33 = vrot.slane %v578_v21, %v2420_v28  ;;  %v608_v34 = vrot.slane %v594_v23, %v2420_v28 }
 0x23d   : > { %v609_v31 = vcombine.low %v585_v24, %v601_v25  ;;  %v610_v32 = vcombine.high %v585_v24, %v601_v25  ;;  %v611_v39 = vcombine.low %v592_v33, %v608_v34  ;;  %v612_v40 = vcombine.high %v592_v33, %v608_v34 }
 0x23f   : > { %1832 = vmatpush3.xpose.msk.msra.mxu1 %vm767_vm2, %v609_v31  ;;  %1837 = vmatpush3.xpose.msk.msra.mxu0 %vm767_vm2, %v610_v32 }
 0x240   : > { %1841 = vmatprep.subr.mxu1 %v2155_v1  ;;  %1846 = vmatprep.subr.mxu0 %v2155_v1 }
 0x242   : > { %1834 = vmatmul.mubr.msk.f32.vlgmr.msra.gmra.mrb[0].mxu1 %vm767_vm2, %v461_v36  ;;  %1839 = vmatmul.mubr.msk.f32.vlgmr.msra.gmra.mrb[2].mxu0 %vm767_vm2, %v462_v37 }
 0x243   : > { %1842 = vmatpush3.xpose.msk.msra.mxu1 %vm767_vm2, %v611_v39  ;;  %1847 = vmatpush3.xpose.msk.msra.mxu0 %vm767_vm2, %v612_v40 }
 0x244   : > { %1843 = vmatprep.mubr.msk.f32.mxu1 %vm2154_vm0, %v2155_v1  ;;  %1848 = vmatprep.mubr.msk.f32.mxu0 %vm2154_vm0, %v2155_v1 }
 0x245   : > { %1851 = vmatprep.subr.mxu1 %v2155_v1  ;;  %1856 = vmatprep.subr.mxu0 %v2155_v1 }
 0x246   : > { %1844 = vmatmul.mubr.msk.f32.vlgmr.msra.gmra.mrb[2].mxu1 %vm767_vm2, %v463_v41  ;;  %1849 = vmatmul.mubr.msk.f32.vlgmr.msra.gmra.mrb[4].mxu0 %vm767_vm2, %v464_v42 }
 0x247   : > { %1853 = vmatprep.mubr.msk.f32.mxu1 %vm2154_vm0, %v2155_v1  ;;  %1858 = vmatprep.mubr.msk.f32.mxu0 %vm2154_vm0, %v2155_v1 }
 0x315   : > { %v840_v46 = vpop.f32.mrb[0].mxu1  ;;  %v916_v47 = vpop.f32.mrb[2].mxu0 }
 0x316   : > { %v841_v48 = vadd.f32 %v840_v46, %v766_v45  ;;  %v917_v49 = vadd.f32 %v916_v47, %v766_v45  ;;  %v1835_v50 = vpop.f32.mrb[1].mxu1  ;;  %v1840_v51 = vpop.f32.mrb[3].mxu0 }
 0x318   : > { %v1072_v52 = vsel %vm767_vm2, %v841_v48, -inf  ;;  %v1075_v53 = vsel %vm767_vm2, %v917_v49, -inf }
 0x319   : > { %1073 = vmax.xlane.f32.xlu1 %v1072_v52  ;;  %v992_v54 = vpop.f32.mrb[2].mxu1  ;;  %1076 = vmax.xlane.f32.xlu0 %v1075_v53  ;;  %v1068_v55 = vpop.f32.mrb[4].mxu0 }
 0x31a   : > { %v993_v56 = vadd.f32 %v992_v54, %v766_v45  ;;  %v1069_v13 = vadd.f32 %v1068_v55, %v766_v45  ;;  %v1845_v57 = vpop.f32.mrb[3].mxu1  ;;  %v1850_v15 = vpop.f32.mrb[5].mxu0 }
 0x31c   : > { %v1078_v58 = vsel %vm767_vm2, %v993_v56, -inf  ;;  %v1081_v59 = vsel %vm767_vm2, %v1069_v13, -inf }
 0x31d   : > { %1079 = vmax.xlane.f32.xlu0 %v1078_v58  ;;  %1082 = vmax.xlane.f32.xlu1 %v1081_v59 }
 0x32e   : > { %615 = vrot.lane.b32.xlu1 %v2392_v8, %s2163_s5 }
 0x333   : > { %613 = vrot.lane.b32.xlu0 %v2386_v6, %s2163_s5 }
 0x3a6   : > { %v1074_v60 = vpop.xlane.xlu1 %1073  ;;  %v1077_v61 = vpop.xlane.xlu0 %1076 }
 0x3a7   : > { %v1084_v62 = vsub.f32 %v841_v48, %v1074_v60  ;;  %v1085_v63 = vsub.f32 %v917_v49, %v1077_v61 }
 0x3a9   : > { %v1088_v2 = vmul.f32 1.442695, %v1084_v62  ;;  %v1090_v3 = vmul.f32 1.442695, %v1085_v63 }
 0x3aa   : > { %v1080_v4 = vpop.xlane.xlu0 %1079  ;;  %v1083_v5 = vpop.xlane.xlu1 %1082 }
 0x3ab   : > { %1974 = vpow2.f32 %v1088_v2  ;;  %v1086_v7 = vsub.f32 %v993_v56, %v1080_v4  ;;  %v1087_v11 = vsub.f32 %v1069_v13, %v1083_v5 }
 0x3ac   : > { %1976 = vpow2.f32 %v1090_v3 }
 0x3ad   : > { %v1092_v12 = vmul.f32 1.442695, %v1086_v7  ;;  %v1094_v14 = vmul.f32 1.442695, %v1087_v11 }
 0x3ae   : > { %v614_v23 = vpop.permute.xlu0 %613  ;;  %v616_v24 = vpop.permute.xlu1 %615 }
 0x3af   : > { %1978 = vpow2.f32 %v1092_v12 }
 0x3b0   : > { %1980 = vpow2.f32 %v1094_v14 }
 0x3b5   : > { %v2480_v8 = vpop.eup %1974 }
 0x3b6   : > { %v2482_v16 = vpop.eup %1976  ;;  %v1096_v6 = vsel %vm767_vm2, %v2480_v8, 0.0 }
 0x3b7   : > { %1097 = vadd.xlane.f32.xlu0 %v1096_v6  ;;  %v1099_v17 = vsel %vm767_vm2, %v2482_v16, 0.0 }
 0x3b8   : > { %1100 = vadd.xlane.f32.xlu1 %v1099_v17 }
 0x3b9   : > { %v2488_v18 = vpop.eup %1978 }
 0x3ba   : > { %v2490_v19 = vpop.eup %1980  ;;  %v1102_v21 = vsel %vm767_vm2, %v2488_v18, 0.0 }
 0x3bb   : > { %1103 = vadd.xlane.f32.xlu0 %v1102_v21  ;;  %v1105_v22 = vsel %vm767_vm2, %v2490_v19, 0.0 }
 0x3bc   : > { %1106 = vadd.xlane.f32.xlu1 %v1105_v22 }
 0x3cd   : > { %617 = vrot.lane.b32.xlu1 %v2397_v10, %s2163_s5 }
 0x3d1   : > { %619 = vrot.lane.b32.xlu0 %v2395_v9, %s2163_s5 }
 0x444   : > { %v1098_v25 = vpop.xlane.xlu0 %1097 }
 0x445   : > { %1982 = vrcp.f32 %v1098_v25  ;;  %v1101_v26 = vpop.xlane.xlu1 %1100 }
 0x446   : > { %1984 = vrcp.f32 %v1101_v26 }
 0x448   : > { %v1104_v27 = vpop.xlane.xlu0 %1103 }
 0x449   : > { %v1107_v29 = vpop.xlane.xlu1 %1106  ;;  %1986 = vrcp.f32 %v1104_v27 }
 0x44a   : > { %1988 = vrcp.f32 %v1107_v29 }
 0x44c   : > { %v620_v30 = vpop.permute.xlu0 %619 }
 0x44d   : > { %v641_v31 = vcombine.low %v616_v24, %v620_v30  ;;  %v642_v32 = vcombine.high %v616_v24, %v620_v30  ;;  %v618_v33 = vpop.permute.xlu1 %617 }
 0x44e   : > { %v625_v34 = vcombine.low %v614_v23, %v618_v33  ;;  %v626_v35 = vcombine.high %v614_v23, %v618_v33 }
 0x44f   : > { %v1983_v10 = vpop.eup %1982  ;;  %v649_v36 = vrot.slane %v641_v31, %v2409_v20  ;;  %v656_v9 = vrot.slane %v642_v32, %v2409_v20 }
 0x450   : > { %v1985_v37 = vpop.eup %1984  ;;  %v633_v38 = vrot.slane %v625_v34, %v2409_v20  ;;  %v640_v39 = vrot.slane %v626_v35, %v2409_v20  ;;  %v1112_v43 = vmul.f32 %v1983_v10, %v1098_v25 }
 0x451   : > { %v1113_v44 = vmul.f32 %v1985_v37, %v1101_v26 }
 0x452   : > { %v657_v40 = vcombine.low %v633_v38, %v649_v36  ;;  %v658_v41 = vcombine.high %v633_v38, %v649_v36  ;;  %v673_v42 = vcombine.low %v640_v39, %v656_v9  ;;  %v674_v45 = vcombine.high %v640_v39, %v656_v9 }
 0x453   : > { %v1987_v46 = vpop.eup %1986  ;;  %v1116_v54 = vsub.f32 2.0, %v1112_v43  ;;  %v1117_v55 = vsub.f32 2.0, %v1113_v44 }
 0x454   : > { %v665_v47 = vrot.slane %v657_v40, %v2420_v28  ;;  %v672_v48 = vrot.slane %v658_v41, %v2420_v28  ;;  %v1989_v49 = vpop.eup %1988  ;;  %v681_v50 = vrot.slane %v673_v42, %v2420_v28  ;;  %v688_v51 = vrot.slane %v674_v45, %v2420_v28 }
 0x455   : > { %v1114_v57 = vmul.f32 %v1987_v46, %v1104_v27  ;;  %v1115_v15 = vmul.f32 %v1989_v49, %v1107_v29  ;;  %v1120_v2 = vmul.f32 %v1983_v10, %v1116_v54  ;;  %v1121_v5 = vmul.f32 %v1985_v37, %v1117_v55 }
 0x456   : > { %v693_v52 = vcombine.low %v665_v47, %v672_v48  ;;  %v1778_v53 = vcombine.high %v665_v47, %v672_v48  ;;  %v709_v56 = vcombine.low %v681_v50, %v688_v51  ;;  %v1779_v13 = vcombine.high %v681_v50, %v688_v51  ;;  %v1574_v47 = vld [vmem:[#allocation7 + $0x10] sm:$0xff]  ;;  %v1575_v48 = vld [vmem:[#allocation7 + $0x18] sm:$0xff] }
 0x457   : > { %v1118_v7 = vsub.f32 2.0, %v1114_v57  ;;  %v1119_v11 = vsub.f32 2.0, %v1115_v15  ;;  %v1124_v23 = vmul.f32 %v2480_v8, %v1120_v2  ;;  %v1125_v24 = vmul.f32 %v2482_v16, %v1121_v5  ;;  %v1572_v16 = vld [vmem:[#allocation7] sm:$0xff] }
 0x458   : > { %v700_v58 = vrot.slane %v693_v52, %v2409_v20  ;;  %v708_v59 = vrot.slane %v1778_v53, %v2409_v20  ;;  %v716_v60 = vrot.slane %v709_v56, %v2409_v20  ;;  %v724_v61 = vrot.slane %v1779_v13, %v2409_v20 }
 0x459   : > { %v1122_v25 = vmul.f32 %v1987_v46, %v1118_v7  ;;  %v1123_v26 = vmul.f32 %v1989_v49, %v1119_v11  ;;  %v1889_v53 = vpack.c.bf16 %v1575_v48, %v1574_v47 }
 0x45a   : > { %v725_v62 = vcombine.low %v700_v58, %v708_v59  ;;  %v726_v63 = vcombine.high %v700_v58, %v708_v59  ;;  %v741_v3 = vcombine.low %v716_v60, %v724_v61  ;;  %v742_v4 = vcombine.high %v716_v60, %v724_v61 }
 0x45b   : > { %v1126_v30 = vmul.f32 %v2488_v18, %v1122_v25  ;;  %v1127_v8 = vmul.f32 %v2490_v19, %v1123_v26  ;;  %v1573_v18 = vld [vmem:[#allocation7 + $0x8] sm:$0xff] }
 0x45c   : > { %v733_v12 = vrot.slane %v725_v62, %v2420_v28  ;;  %v749_v14 = vrot.slane %v741_v3, %v2420_v28  ;;  %v740_v6 = vrot.slane %v726_v63, %v2420_v28  ;;  %v756_v17 = vrot.slane %v742_v4, %v2420_v28 }
 0x45d   : > { %v1886_v19 = vpack.c.bf16 %v1573_v18, %v1572_v16 }
 0x45e   : > { %v757_v21 = vcombine.low %v733_v12, %v749_v14  ;;  %v758_v22 = vcombine.high %v733_v12, %v749_v14  ;;  %v759_v27 = vcombine.low %v740_v6, %v756_v17  ;;  %v760_v29 = vcombine.high %v740_v6, %v756_v17 }
 0x460   : > { %1852 = vmatpush3.msra.mxu1 %v757_v21  ;;  %1857 = vmatpush3.msra.mxu0 %v758_v22 }
 0x461   : > { %1854 = vmatmul.mubr.msk.f32.vlgmr.msra.gmra.mrb[4].mxu1 %vm767_vm2, %v1124_v23  ;;  %1859 = vmatmul.mubr.msk.f32.vlgmr.msra.gmra.mrb[6].mxu0 %vm767_vm2, %v1125_v24  ;;  %v1794_v23 = vld [vmem:[%s2608_s3] ss:$0 sm:$0xff] }
 0x462   : > { %1861 = vmatprep.subr.mxu1 %v2155_v1  ;;  %1866 = vmatprep.subr.mxu0 %v2155_v1 }
 0x463   : > { %1862 = vmatpush3.msra.mxu1 %v759_v27  ;;  %1867 = vmatpush3.msra.mxu0 %v760_v29 }
 0x464   : > { %1863 = vmatprep.mubr.msk.f32.mxu1 %vm2154_vm0, %v2155_v1  ;;  %1868 = vmatprep.mubr.msk.f32.mxu0 %vm2154_vm0, %v2155_v1 }
 0x465   : > { %1864 = vmatmul.mubr.msk.f32.vlgmr.msra.gmra.mrb[6].mxu1 %vm767_vm2, %v1126_v30  ;;  %1869 = vmatmul.mubr.msk.f32.vlgmr.msra.gmra.mrb[8].mxu0 %vm767_vm2, %v1127_v8 }
 0x466   : > { %1885 = vmatprep.subr.bf16.mxu1 %v2153_v0  ;;  %1879 = vmatprep.mubr.msk.f32.mxu1 %vm2154_vm0, %v2155_v1 }
 0x467   : > { %1887 = vmatpush3.bf16.msra.mxu1 %v1886_v19 }
 0x468   : > { %1888 = vmatprep.subr.bf16.mxu1 %v2153_v0 }
 0x46b   : > { %1890 = vmatpush3.bf16.msra.mxu1 %v1889_v53 }
 0x534   : > { %v1197_v31 = vpop.f32.mrb[4].mxu1  ;;  %v1270_v32 = vpop.f32.mrb[6].mxu0 }
 0x535   : > { %v1855_v33 = vpop.f32.mrb[5].mxu1  ;;  %v1860_v34 = vpop.f32.mrb[7].mxu0 }
 0x538   : > { %v1343_v35 = vpop.f32.mrb[6].mxu1  ;;  %v1416_v10 = vpop.f32.mrb[8].mxu0 }
 0x539   : > { %v1420_v36 = vcombine.low %v1197_v31, %v1343_v35  ;;  %v1421_v9 = vcombine.high %v1197_v31, %v1343_v35  ;;  %v1436_v37 = vcombine.low %v1270_v32, %v1416_v10  ;;  %v1437_v38 = vcombine.high %v1270_v32, %v1416_v10  ;;  %v1865_v39 = vpop.f32.mrb[7].mxu1  ;;  %v1870_v40 = vpop.f32.mrb[9].mxu0 }
 0x53b   : > { %v1428_v1 = vrot.slane %v1420_v36, %v2409_v20  ;;  %v1435_v41 = vrot.slane %v1421_v9, %v2409_v20  ;;  %v1444_v42 = vrot.slane %v1436_v37, %v2409_v20  ;;  %v1451_v0 = vrot.slane %v1437_v38, %v2409_v20 }
 0x53d   : > { %v1452_v43 = vcombine.low %v1428_v1, %v1444_v42  ;;  %v1453_v44 = vcombine.high %v1428_v1, %v1444_v42  ;;  %v1468_v45 = vcombine.low %v1435_v41, %v1451_v0  ;;  %v1469_v46 = vcombine.high %v1435_v41, %v1451_v0 }
 0x53f   : > { %v1460_v49 = vrot.slane %v1452_v43, %v2420_v28  ;;  %v1467_v50 = vrot.slane %v1453_v44, %v2420_v28  ;;  %v1476_v51 = vrot.slane %v1468_v45, %v2420_v28  ;;  %v1483_v52 = vrot.slane %v1469_v46, %v2420_v28 }
 0x541   : > { %v1488_v54 = vcombine.low %v1460_v49, %v1467_v50  ;;  %v1792_v55 = vcombine.high %v1460_v49, %v1467_v50  ;;  %v1504_v56 = vcombine.low %v1476_v51, %v1483_v52  ;;  %v1793_v13 = vcombine.high %v1476_v51, %v1483_v52 }
 0x543   : > { %v1495_v57 = vrot.slane %v1488_v54, %v2409_v20  ;;  %v1503_v15 = vrot.slane %v1792_v55, %v2409_v20  ;;  %v1511_v58 = vrot.slane %v1504_v56, %v2409_v20  ;;  %v1519_v59 = vrot.slane %v1793_v13, %v2409_v20 }
 0x545   : > { %v1521_v60 = vcombine.high %v1495_v57, %v1503_v15  ;;  %v1537_v61 = vcombine.high %v1511_v58, %v1519_v59  ;;  %v1520_v62 = vcombine.low %v1495_v57, %v1503_v15  ;;  %v1536_v63 = vcombine.low %v1511_v58, %v1519_v59 }
 0x547   : > { %v1535_v2 = vrot.slane %v1521_v60, %v2420_v28  ;;  %v1551_v3 = vrot.slane %v1537_v61, %v2420_v28  ;;  %v1528_v4 = vrot.slane %v1520_v62, %v2420_v28  ;;  %v1544_v5 = vrot.slane %v1536_v63, %v2420_v28 }
 0x549   : > { %v1554_v7 = vcombine.low %v1535_v2, %v1551_v3  ;;  %v1553_v11 = vcombine.high %v1528_v4, %v1544_v5  ;;  %v1555_v12 = vcombine.high %v1535_v2, %v1551_v3  ;;  %v1552_v14 = vcombine.low %v1528_v4, %v1544_v5 }
 0x54b   : > { %1561 = vrot.lane.b32.xlu0 %v1554_v7, %s2164_s6  ;;  %1557 = vrot.lane.b32.xlu1 %v1553_v11, %s2165_s26 }
 0x54f   : > { %1565 = vrot.lane.b32.xlu1 %v1555_v12, %s2166_s10 }
 0x5bd   : > { %v1558_v20 = vpop.permute.xlu1 %1557  ;;  %v1562_v6 = vpop.permute.xlu0 %1561 }
 0x5be   : > { %v1568_v17 = vsel %vm767_vm2, %v1552_v14, %v1558_v20 }
 0x5bf   : > { %v1569_v21 = vsel %vm245_vm1, %v1568_v17, %v1562_v6 }
 0x5c1   : > { %v1566_v28 = vpop.permute.xlu1 %1565 }
 0x5c2   : > { %v1571_v22 = vsel %vm1570_vm4, %v1569_v21, %v1566_v28 }
 0x5c3   : > { %1880 = vmatmul.mubr.msk.f32.vlgmr.msra.gmra.mrb[8].mxu1 %vm1583_vm5, %v1571_v22 }
 0x696   : > { %v1653_v24 = vpop.f32.mrb[8].mxu1 }
 0x697   : > { %v1654_v25 = vadd.f32 %v1794_v23, %v1653_v24  ;;  %v1881_v26 = vpop.f32.mrb[9].mxu1 }
 0x699   : > { %1657 = vst.msk [vmem:[%s241_s11] sm:$0xff] %vm1583_vm5, %v1654_v25 }
 0x69a   : > { %2089 = shalt.err (!%p2086_p2)
}
 0x69b   : > { %s2090_s29 = scalar_lea.hbm %s2561_s21, 128  ;;  %s2094_s26 = scalar_lea.hbm %s2609_s4, 256 }
 0x69c   : > { %p2091_p13 = scmp.ne.s32.totalorder %s2561_s21, %s2090_s29  ;;  %p2095_p4 = scmp.lt.u32.totalorder %s2561_s21, %s2609_s4 }
 0x69d   : > { %p2096_p5 = scmp.lt.u32.totalorder %s2094_s26, %s2090_s29  ;;  %p2098_p11 = scmp.lt.u32.totalorder %s2090_s29, %s2561_s21 }
 0x69e   : > { %p2092_p6 = pnand %p2091_p13, %p2623_p0 }
 0x69f   : > { %p2097_p8 = por %p2096_p5, %p2095_p4 }
 0x6a0   : > { %p2093_p10 = pneg %p2092_p6 }
 0x6a1   : > { %p2099_p1 = por %p2098_p11, %p2097_p8 }
 0x6a3   : > { %p2100_p3 = pnand %p2099_p1, %p2093_p10 }
 0x6a5   : > { %2103 = shalt.err (!%p2100_p3)
}
 0x6a6   : > { %1901 = dma.vmem_to_hbm [thread:$0]  (%p2623_p0), %s2563_s12, 128, %s2561_s21, %s1659_s23  }
 0x6a7 PF: > { %s1684_s20 = sand.u32 1, %s2134_s15   ;;  %p2624_p7 = scmp.ne.s32.totalorder %s2614_s22, 0 }
 0x6a8   : > { %p2625_p9 = scmp.ge.s32.totalorder %s2146_s18, 2  ;;  %s1685_s28 = scalar_lea.sflag [#allocation4], %s1684_s20 }
 0x6aa   : > { %p1915_p12 = pnand %p2625_p9, %p2624_p7 }
 0x6ac   : > { %2129 = dma.done.wait (!%p1915_p12), %s1685_s28, 128  }
 0x6ad   : > { %2131 = vsyncadd (!%p1915_p12), %s1685_s28, 4294967168  ;;  %p18_p2 = scmp.ge.s32.totalorder %s2303_s9, 4   ;;  %s2626_s15 = smov %s2138_s16 }
 0x6ae   : > { %s2627_s16 = smov %s2142_s17  ;;  %s2628_s17 = smov %s2319_s14 }
 0x6af   : > { %s2629_s18 = smov %s2303_s9  ;;  %20 = sbr.rel (!%p18_p2) target bundleno = 6 (0x6), region = 89 }
 0x6b6   :  { %1690 = vsyncpa [#allocation3], 1 }
 0x6b7   :  { %1692 = vsyncpa [#allocation3 + $0x1], 1 }
 0x6b8   :  { %1693 = vsyncpa [#allocation6], 1 }
 0x6b9   :  { %1694 = vsyncpa [#allocation4], 1 }
 0x6ba   :  { %1696 = vsyncpa [#allocation4 + $0x1], 1 }

</bundles_post_ra>
